<compile_context>
chip_gen: v7x
topology: tpu7x:2x2x1
jax: 0.10.0
libtpu: 0.0.40
codegen_flags: <defaults>
</compile_context>

<pallas_src>
import jax
import jax.numpy as jnp
from jax.experimental import pallas as pl
from jax.experimental.pallas import tpu as pltpu

LANE = 128  # TPU lane width; final layer is padded to this many output columns


def dnn3l_kernel(x_ref, w1_ref, b1_ref, w2_ref, b2_ref, w3_ref, b3_ref, o_ref):
    """Fused forward for one batch tile. BN already folded into W/b; f32 accumulation."""
    # fc1: (Dropout = identity) Linear -> ReLU   (BN folded into w1/b1)
    h = jnp.dot(x_ref[...], w1_ref[...], preferred_element_type=jnp.float32)
    h = jnp.maximum(h + b1_ref[...], 0.0)

    # fc2: Linear -> ReLU   (BN folded into w2/b2, previous BN shift folded into b2)
    h = jnp.dot(h.astype(w2_ref.dtype), w2_ref[...], preferred_element_type=jnp.float32)
    h = jnp.maximum(h + b2_ref[...], 0.0)

    # fc3: Linear only (output columns zero-padded to LANE for lane-dense stores)
    out = jnp.dot(h.astype(w3_ref.dtype), w3_ref[...], preferred_element_type=jnp.float32)
    o_ref[...] = (out + b3_ref[...]).astype(o_ref.dtype)


def _full_spec(p):
    nd = p.ndim
    return pl.BlockSpec(p.shape, lambda *idx: (0,) * nd)


def dnn_3l_forward(x, params, output_size, *, tile_b=None):
    """x: [B, input_size]. params: folded dict (w1,b1,w2,b2,w3,b3). Returns [B, output_size]."""
    B, F = x.shape
    n1 = params["w1"].shape[1]
    n2 = params["w2"].shape[1]
    n_out_pad = params["w3"].shape[1]

    if tile_b is None:
        # Small batches: one grid step (whole batch). Large batches: 128-multiple tiles.
        tile_b = B if B <= 1024 else 1024
    assert B % tile_b == 0, "batch must be a multiple of the batch tile"
    assert tile_b == B or tile_b % 8 == 0, "batch tile must be a sublane multiple"

    param_order = ["w1", "b1", "w2", "b2", "w3", "b3"]
    param_list = [params[k] for k in param_order]

    grid = (B // tile_b,)
    in_specs = [pl.BlockSpec((tile_b, F), lambda i: (i, 0))] + [_full_spec(p) for p in param_list]
    out_specs = pl.BlockSpec((tile_b, n_out_pad), lambda i: (i, 0))

    flops = 2 * B * (F * n1 + n1 * n2 + n2 * n_out_pad)
    bytes_accessed = (x.size * x.dtype.itemsize
                      + B * n_out_pad * 4
                      + sum(int(p.size) * p.dtype.itemsize for p in param_list))

    out_padded = pl.pallas_call(
        dnn3l_kernel,
        out_shape=jax.ShapeDtypeStruct((B, n_out_pad), jnp.float32),
        grid_spec=pltpu.PrefetchScalarGridSpec(
            num_scalar_prefetch=0,
            grid=grid,
            in_specs=in_specs,
            out_specs=out_specs,
        ),
        compiler_params=pltpu.CompilerParams(
            dimension_semantics=("parallel",)),
        cost_estimate=pl.CostEstimate(
            flops=flops, transcendentals=0, bytes_accessed=bytes_accessed),
    )(x, *param_list)

    return out_padded[:, :output_size]


# ---------------------------------------------------------------------------
# Parameter init (matching the PyTorch module) + eval-mode BN folding
# ---------------------------------------------------------------------------
def _xavier_uniform(key, fan_in, fan_out):
    # torch.nn.init.xavier_uniform_ on a (out, in) weight; symmetric, so build (in, out).
    bound = (6.0 / (fan_in + fan_out)) ** 0.5
    return jax.random.uniform(key, (fan_in, fan_out), jnp.float32, -bound, bound)


def _linear_bias(key, fan_in, fan_out):
    # PyTorch nn.Linear default bias init: U(-1/sqrt(fan_in), 1/sqrt(fan_in)).
    bound = 1.0 / (fan_in ** 0.5)
    return jax.random.uniform(key, (1, fan_out), jnp.float32, -bound, bound)


def init_raw_params(key, input_size, n_l1, n_l2, output_size=1, eps=1e-5):
    keys = jax.random.split(key, 6)
    raw = {}
    dims = [(input_size, n_l1), (n_l1, n_l2), (n_l2, output_size)]
    for li, (fi, fo) in enumerate(dims, start=1):
        raw[f"w{li}"] = _xavier_uniform(keys[2 * (li - 1)], fi, fo)
        raw[f"b{li}"] = _linear_bias(keys[2 * (li - 1) + 1], fi, fo)
    # BatchNorm1d (eval mode): running_mean=0, running_var=1, gamma=1, beta=0.
    for li, n in zip((1, 2), (n_l1, n_l2)):
        gamma = jnp.ones((1, n), jnp.float32)
        beta = jnp.zeros((1, n), jnp.float32)
        running_mean = jnp.zeros((1, n), jnp.float32)
        running_var = jnp.ones((1, n), jnp.float32)
        scale = gamma / jnp.sqrt(running_var + eps)
        shift = beta - running_mean * scale
        raw[f"s{li}"] = scale
        raw[f"t{li}"] = shift
    return raw


def fold_params(raw, *, lane_pad=LANE, dtype=jnp.float32):
    """Fold eval-mode BN into the Linear layers and lane-pad the output layer.

    relu(xW+b)*s + t == relu(x(W*s) + b*s) + t  (requires s > 0),
    and the leftover shift t folds into the next layer's bias.
    """
    s1, t1, s2, t2 = raw["s1"], raw["t1"], raw["s2"], raw["t2"]
    if not (float(jnp.min(s1)) > 0.0 and float(jnp.min(s2)) > 0.0):
        raise ValueError("BN scale must be positive to fold through ReLU")

    w1 = raw["w1"] * s1
    b1 = raw["b1"] * s1
    w2 = raw["w2"] * s2
    b2 = (t1 @ raw["w2"] + raw["b2"]) * s2
    w3 = raw["w3"]
    b3 = t2 @ raw["w3"] + raw["b3"]

    # Zero-pad final layer to `lane_pad` output columns -> lane-dense output stores.
    n_out = w3.shape[1]
    pad = (-n_out) % lane_pad
    w3 = jnp.pad(w3, ((0, 0), (0, pad)))
    b3 = jnp.pad(b3, ((0, 0), (0, pad)))

    return {
        "w1": w1.astype(dtype), "b1": b1.astype(jnp.float32),
        "w2": w2.astype(dtype), "b2": b2.astype(jnp.float32),
        "w3": w3.astype(dtype), "b3": b3.astype(jnp.float32),
    }


def reference_forward(x, raw):
    """Pure-JAX reference of the original (unfolded) eval-mode forward."""
    h = jnp.maximum(x @ raw["w1"] + raw["b1"], 0.0) * raw["s1"] + raw["t1"]
    h = jnp.maximum(h @ raw["w2"] + raw["b2"], 0.0) * raw["s2"] + raw["t2"]
    return h @ raw["w3"] + raw["b3"]


if __name__ == "__main__":
    input_size, n_l1, n_l2, output_size = 32, 64, 32, 1

    key = jax.random.PRNGKey(0)
    kx, kp = jax.random.split(key)
    raw = init_raw_params(kp, input_size, n_l1, n_l2, output_size)
    params = fold_params(raw, dtype=jnp.float32)  # use dtype=jnp.bfloat16 on v6e/v7x for HBM/VMEM savings

    # Small batch: single grid step (whole batch in one tile).
    B = 16
    x = jax.random.normal(kx, (B, input_size), jnp.float32)
    out = jax.block_until_ready(dnn_3l_forward(x, params, output_size))
    ref = reference_forward(x, raw)
    assert out.shape == (B, output_size)
    assert jnp.allclose(out, ref, atol=1e-4, rtol=1e-4), "mismatch vs JAX reference (small B)"

    # Larger batch: tiled grid with a 128-row batch tile (MXU-friendly M).
    B2 = 256
    x2 = jax.random.normal(jax.random.PRNGKey(1), (B2, input_size), jnp.float32)
    out2 = jax.block_until_ready(dnn_3l_forward(x2, params, output_size, tile_b=128))
    ref2 = reference_forward(x2, raw)
    assert out2.shape == (B2, output_size)
    assert jnp.allclose(out2, ref2, atol=1e-4, rtol=1e-4), "mismatch vs JAX reference (tiled B)"

    print("KERNEL_OK")
</pallas_src>

<mosaic_0001>
module attributes {stable_mosaic.version = 11 : i64} {
  func.func @dnn3l_kernel(%arg0: i32, %arg1: memref<16x32xf32, #tpu.memory_space<vmem>>, %arg2: memref<32x64xf32, #tpu.memory_space<vmem>>, %arg3: memref<1x64xf32, #tpu.memory_space<vmem>>, %arg4: memref<64x32xf32, #tpu.memory_space<vmem>>, %arg5: memref<1x32xf32, #tpu.memory_space<vmem>>, %arg6: memref<32x128xf32, #tpu.memory_space<vmem>>, %arg7: memref<1x128xf32, #tpu.memory_space<vmem>>, %arg8: memref<16x128xf32, #tpu.memory_space<vmem>>) attributes {dimension_semantics = [#tpu.dimension_semantics<parallel>], iteration_bounds = array<i64: 1>, scalar_prefetch = 0 : i64, scratch_operands = 0 : i64, tpu.core_type = #tpu.core_type<tc>, window_params = [{transform_indices = @transform_0, window_bounds = array<i64: 16, 32>}, {pipeline_mode = #tpu.pipeline_mode<synchronous>, transform_indices = @transform_1, window_bounds = array<i64: 32, 64>}, {pipeline_mode = #tpu.pipeline_mode<synchronous>, transform_indices = @transform_2, window_bounds = array<i64: 1, 64>}, {pipeline_mode = #tpu.pipeline_mode<synchronous>, transform_indices = @transform_3, window_bounds = array<i64: 64, 32>}, {pipeline_mode = #tpu.pipeline_mode<synchronous>, transform_indices = @transform_4, window_bounds = array<i64: 1, 32>}, {pipeline_mode = #tpu.pipeline_mode<synchronous>, transform_indices = @transform_5, window_bounds = array<i64: 32, 128>}, {pipeline_mode = #tpu.pipeline_mode<synchronous>, transform_indices = @transform_6, window_bounds = array<i64: 1, 128>}, {transform_indices = @transform_7, window_bounds = array<i64: 16, 128>}]} {
    %c0 = arith.constant 0 : index
    %c0_0 = arith.constant 0 : index
    %0 = vector.load %arg1[%c0, %c0_0] : memref<16x32xf32, #tpu.memory_space<vmem>>, vector<16x32xf32>
    %c0_1 = arith.constant 0 : index
    %c0_2 = arith.constant 0 : index
    %1 = vector.load %arg2[%c0_1, %c0_2] : memref<32x64xf32, #tpu.memory_space<vmem>>, vector<32x64xf32>
    %cst = arith.constant dense<0.000000e+00> : vector<16x64xf32>
    %2 = tpu.matmul %0, %1, %cst {dimension_numbers = #tpu.dot_dimension_numbers<[1], [0], [0], [1], [0, 0, 1, 1], [], []>} : vector<16x32xf32>, vector<32x64xf32>, vector<16x64xf32> -> vector<16x64xf32>
    %c0_3 = arith.constant 0 : index
    %c0_4 = arith.constant 0 : index
    %3 = vector.load %arg3[%c0_3, %c0_4] : memref<1x64xf32, #tpu.memory_space<vmem>>, vector<1x64xf32>
    %4 = vector.broadcast %3 : vector<1x64xf32> to vector<16x64xf32>
    %5 = arith.addf %2, %4 : vector<16x64xf32>
    %cst_5 = arith.constant 0.000000e+00 : f32
    %6 = vector.broadcast %cst_5 : f32 to vector<16x64xf32>
    %7 = arith.maximumf %5, %6 : vector<16x64xf32>
    %c0_6 = arith.constant 0 : index
    %c0_7 = arith.constant 0 : index
    %8 = vector.load %arg4[%c0_6, %c0_7] : memref<64x32xf32, #tpu.memory_space<vmem>>, vector<64x32xf32>
    %cst_8 = arith.constant dense<0.000000e+00> : vector<16x32xf32>
    %9 = tpu.matmul %7, %8, %cst_8 {dimension_numbers = #tpu.dot_dimension_numbers<[1], [0], [0], [1], [0, 0, 1, 1], [], []>} : vector<16x64xf32>, vector<64x32xf32>, vector<16x32xf32> -> vector<16x32xf32>
    %c0_9 = arith.constant 0 : index
    %c0_10 = arith.constant 0 : index
    %10 = vector.load %arg5[%c0_9, %c0_10] : memref<1x32xf32, #tpu.memory_space<vmem>>, vector<1x32xf32>
    %11 = vector.broadcast %10 : vector<1x32xf32> to vector<16x32xf32>
    %12 = arith.addf %9, %11 : vector<16x32xf32>
    %cst_11 = arith.constant 0.000000e+00 : f32
    %13 = vector.broadcast %cst_11 : f32 to vector<16x32xf32>
    %14 = arith.maximumf %12, %13 : vector<16x32xf32>
    %c0_12 = arith.constant 0 : index
    %c0_13 = arith.constant 0 : index
    %15 = vector.load %arg6[%c0_12, %c0_13] : memref<32x128xf32, #tpu.memory_space<vmem>>, vector<32x128xf32>
    %cst_14 = arith.constant dense<0.000000e+00> : vector<16x128xf32>
    %16 = tpu.matmul %14, %15, %cst_14 {dimension_numbers = #tpu.dot_dimension_numbers<[1], [0], [0], [1], [0, 0, 1, 1], [], []>} : vector<16x32xf32>, vector<32x128xf32>, vector<16x128xf32> -> vector<16x128xf32>
    %c0_15 = arith.constant 0 : index
    %c0_16 = arith.constant 0 : index
    %17 = vector.load %arg7[%c0_15, %c0_16] : memref<1x128xf32, #tpu.memory_space<vmem>>, vector<1x128xf32>
    %18 = vector.broadcast %17 : vector<1x128xf32> to vector<16x128xf32>
    %19 = arith.addf %16, %18 : vector<16x128xf32>
    %c0_17 = arith.constant 0 : index
    %c0_18 = arith.constant 0 : index
    %20 = vector.load %arg8[%c0_17, %c0_18] : memref<16x128xf32, #tpu.memory_space<vmem>>, vector<16x128xf32>
    tpu.vector_store %arg8[%c0_17, %c0_18], %19 {strides = array<i32>} : memref<16x128xf32, #tpu.memory_space<vmem>>, vector<16x128xf32>,
    return
  }
  func.func @transform_0(%arg0: i32) -> (i32, i32) {
    %c0_i32 = arith.constant 0 : i32
    %c0_i32_0 = arith.constant 0 : i32
    return %arg0, %c0_i32 : i32, i32
  }
  func.func @transform_1(%arg0: i32) -> (i32, i32) {
    %c0_i32 = arith.constant 0 : i32
    %c0_i32_0 = arith.constant 0 : i32
    %c0_i32_1 = arith.constant 0 : i32
    return %c0_i32, %c0_i32_0 : i32, i32
  }
  func.func @transform_2(%arg0: i32) -> (i32, i32) {
    %c0_i32 = arith.constant 0 : i32
    %c0_i32_0 = arith.constant 0 : i32
    %c0_i32_1 = arith.constant 0 : i32
    return %c0_i32, %c0_i32_0 : i32, i32
  }
  func.func @transform_3(%arg0: i32) -> (i32, i32) {
    %c0_i32 = arith.constant 0 : i32
    %c0_i32_0 = arith.constant 0 : i32
    %c0_i32_1 = arith.constant 0 : i32
    return %c0_i32, %c0_i32_0 : i32, i32
  }
  func.func @transform_4(%arg0: i32) -> (i32, i32) {
    %c0_i32 = arith.constant 0 : i32
    %c0_i32_0 = arith.constant 0 : i32
    %c0_i32_1 = arith.constant 0 : i32
    return %c0_i32, %c0_i32_0 : i32, i32
  }
  func.func @transform_5(%arg0: i32) -> (i32, i32) {
    %c0_i32 = arith.constant 0 : i32
    %c0_i32_0 = arith.constant 0 : i32
    %c0_i32_1 = arith.constant 0 : i32
    return %c0_i32, %c0_i32_0 : i32, i32
  }
  func.func @transform_6(%arg0: i32) -> (i32, i32) {
    %c0_i32 = arith.constant 0 : i32
    %c0_i32_0 = arith.constant 0 : i32
    %c0_i32_1 = arith.constant 0 : i32
    return %c0_i32, %c0_i32_0 : i32, i32
  }
  func.func @transform_7(%arg0: i32) -> (i32, i32) {
    %c0_i32 = arith.constant 0 : i32
    %c0_i32_0 = arith.constant 0 : i32
    return %arg0, %c0_i32 : i32, i32
  }
}

</mosaic_0001>

<bundles_post_ra>
// kernel: tpu_custom_call.1
= control target key start
LH: loop header
LB: loop body
LE: loop exit
PB: predicated region body
PF: predicated region fallthrough
CT: control target
= control target key end

     0   :  { %vm40_vm0 = vcmask 261120   ;;  %s586_s0 = inlined_call_operand.vmem [shape: f32[16,32], index: 0, kind: input, shape index: {}]   ;;  %s587_s1 = inlined_call_operand.vmem [shape: f32[32,64], index: 1, kind: input, shape index: {}]   ;;  %s588_s2 = inlined_call_operand.vmem [shape: f32[1,64], index: 2, kind: input, shape index: {}]   ;;  %s589_s3 = inlined_call_operand.vmem [shape: f32[64,32], index: 3, kind: input, shape index: {}]   ;;  %s590_s4 = inlined_call_operand.vmem [shape: f32[1,32], index: 4, kind: input, shape index: {}]   ;;  %s591_s5 = inlined_call_operand.vmem [shape: f32[32,128], index: 5, kind: input, shape index: {}]   ;;  %s592_s6 = inlined_call_operand.vmem [shape: f32[1,128], index: 6, kind: input, shape index: {}]   ;;  %s593_s7 = inlined_call_operand.hbm [shape: f32[16,128], index: 7, kind: output, shape index: {}]  }
   0x1   :  { %v29_v0 = vld [vmem:[%s587_s1] sm:$0xff]  ;;  %v30_v1 = vld [vmem:[%s587_s1 + $0x8] sm:$0xff]  ;;  %v31_v2 = vld [vmem:[%s587_s1 + $0x10] sm:$0xff] }
   0x2   :  { %v405_v3 = vpack.c.bf16 %v30_v1, %v29_v0  ;;  %v32_v4 = vld [vmem:[%s587_s1 + $0x18] sm:$0xff]  ;;  %v27_v5 = vld [vmem:[%s586_s0] sm:$0xff]  ;;  %v125_v8 = vld [vmem:[%s589_s3 + $0x8] sm:$0xff] }
   0x3   :  { %v409_v6 = vpack.c.bf16 %v32_v4, %v31_v2  ;;  %372 = vmatprep.mubr.msk.f32.mxu0 %vm40_vm0, %v27_v5  ;;  %v124_v7 = vld [vmem:[%s589_s3] sm:$0xff]  ;;  %v126_v9 = vld [vmem:[%s589_s3 + $0x10] sm:$0xff]  ;;  %v127_v11 = vld [vmem:[%s589_s3 + $0x18] sm:$0xff] }
   0x4   :  { %406 = vmatprep.subr.bf16.mxu0 %v405_v3  ;;  %v413_v10 = vpack.c.bf16 %v125_v8, %v124_v7  ;;  %v417_v12 = vpack.c.bf16 %v127_v11, %v126_v9  ;;  %v128_v13 = vld [vmem:[%s589_s3 + $0x20] sm:$0xff]  ;;  %v129_v14 = vld [vmem:[%s589_s3 + $0x28] sm:$0xff] }
   0x5   :  { %408 = vmatpush3.bf16.msra.mxu0 %v405_v3 }
   0x6   :  { %12 = vsyncpa [#allocation3], 0  ;;  %410 = vmatprep.subr.bf16.mxu0 %v409_v6  ;;  %414 = vmatprep.subr.bf16.mxu1 %v413_v10  ;;  %v421_v15 = vpack.c.bf16 %v129_v14, %v128_v13  ;;  %v28_v16 = vld [vmem:[%s586_s0 + $0x8] sm:$0xff]  ;;  %v130_v17 = vld [vmem:[%s589_s3 + $0x30] sm:$0xff]  ;;  %vm139_vm1 = vcmask 523264  }
   0x7   :  { %416 = vmatpush3.bf16.msra.mxu1 %v413_v10  ;;  %v131_v18 = vld [vmem:[%s589_s3 + $0x38] sm:$0xff]  ;;  %v223_v20 = vld [vmem:[%s591_s5] sm:$0xff]  ;;  %v224_v21 = vld [vmem:[%s591_s5 + $0x8] sm:$0xff] }
   0x8   :  { %418 = vmatprep.subr.bf16.mxu1 %v417_v12  ;;  %v425_v19 = vpack.c.bf16 %v131_v18, %v130_v17  ;;  %v429_v22 = vpack.c.bf16 %v224_v21, %v223_v20  ;;  %v333_v23 = vld [vmem:[%s588_s2] ss:$0 sm:$0xff]  ;;  %v225_v30 = vld [vmem:[%s591_s5 + $0x10] sm:$0xff]  ;;  %v226_v31 = vld [vmem:[%s591_s5 + $0x18] sm:$0xff]  ;;  %s464_s5 = smov [#allocation2]  }
   0x9   :  { %412 = vmatpush3.bf16.msra.mxu0 %v409_v6  ;;  %v433_v32 = vpack.c.bf16 %v226_v31, %v225_v30  ;;  %v336_v33 = vld [vmem:[%s590_s4] ss:$0 sm:$0xff]  ;;  %s322_s16 = sshll.u32 %s464_s5, 4  ;;  %s323_s16 = int_to_ptr.vmem [resolvable:$true] %s322_s16 }
   0xa   :  { %430 = vmatprep.subr.bf16.mxu0 %v429_v22  ;;  %v339_v40 = vld [vmem:[%s592_s6] ss:$0 sm:$0xff]  ;;  %s440_s4 = scalar_lea.vmem %s323_s16, 256  ;;  %p445_p1 = scmp.lt.s32.totalorder %s323_s16, %s323_s16 }
   0xb   :  { %420 = vmatpush3.bf16.msra.mxu1 %v417_v12  ;;  %p441_p0 = scmp.ne.s32.totalorder %s323_s16, %s440_s4  ;;  %p446_p2 = scmp.lt.s32.totalorder %s440_s4, %s440_s4 }
   0xc   :  { %373 = vmatmul.mubr.msk.f32.vlgmr.msra.gmra.mrb[0].mxu0 %vm40_vm0, %v28_v16  ;;  %422 = vmatprep.subr.bf16.mxu1 %v421_v15 }
   0xd   :  { %432 = vmatpush3.bf16.msra.mxu0 %v429_v22  ;;  %p447_p3 = por %p446_p2, %p445_p1 }
   0xe   :  { %434 = vmatprep.subr.bf16.mxu0 %v433_v32 }
   0xf   :  { %424 = vmatpush3.bf16.msra.mxu1 %v421_v15  ;;  %p448_p4 = pnand %p447_p3, %p441_p0 }
  0x10   :  { %426 = vmatprep.subr.bf16.mxu1 %v425_v19 }
  0x11   :  { %436 = vmatpush3.bf16.msra.mxu0 %v433_v32 }
  0x13   :  { %428 = vmatpush3.bf16.msra.mxu1 %v425_v19 }
  0xdf   :  { %v374_v24 = vpop.f32.mrb[0].mxu0 }
  0xe0   :  { %v119_v25 = vadd.f32 %v374_v24, %v333_v23  ;;  %v113_v26 = vpop.f32.mrb[1].mxu0 }
  0xe1   :  { %v114_v27 = vadd.f32 %v333_v23, %v113_v26 }
  0xe2   :  { %v123_v29 = vmax.f32 %v119_v25, 0.0 }
  0xe3   :  { %v122_v28 = vmax.f32 %v114_v27, 0.0 }
  0xe5   :  { %391 = vmatprep.mubr.msk.f32.mxu1 %vm139_vm1, %v122_v28 }
  0xe6   :  { %392 = vmatmul.mubr.msk.f32.vlgmr.msra.gmra.mrb[0].mxu1 %vm139_vm1, %v123_v29 }
 0x1b9   :  { %v393_v34 = vpop.f32.mrb[0].mxu1 }
 0x1ba   :  { %v218_v35 = vadd.f32 %v393_v34, %v336_v33  ;;  %v212_v36 = vpop.f32.mrb[1].mxu1 }
 0x1bb   :  { %v213_v37 = vadd.f32 %v336_v33, %v212_v36 }
 0x1bc   :  { %v222_v39 = vmax.f32 %v218_v35, 0.0 }
 0x1bd   :  { %v221_v38 = vmax.f32 %v213_v37, 0.0 }
 0x1bf   :  { %402 = vmatprep.mubr.msk.f32.mxu0 %vm40_vm0, %v221_v38 }
 0x1c0   :  { %403 = vmatmul.mubr.msk.f32.vlgmr.msra.gmra.mrb[2].mxu0 %vm40_vm0, %v222_v39 }
 0x293   :  { %v404_v41 = vpop.f32.mrb[2].mxu0 }
 0x294   :  { %v312_v42 = vadd.f32 %v404_v41, %v339_v40  ;;  %v306_v43 = vpop.f32.mrb[3].mxu0 }
 0x295   :  { %v307_v44 = vadd.f32 %v339_v40, %v306_v43 }
 0x296   :  { %316 = vst [vmem:[#allocation2 + $0x8] sm:$0xff] %v312_v42 }
 0x297   :  { %315 = vst [vmem:[#allocation2] sm:$0xff] %v307_v44 }
 0x298   :  { %451 = shalt.err (!%p448_p4)
}
 0x299   :  { %s452_s6 = scalar_lea.hbm %s593_s7, 256 }
 0x29a   :  { %p453_p5 = scmp.ne.s32.totalorder %s593_s7, %s452_s6  ;;  %p456_p6 = scmp.lt.u32.totalorder %s452_s6, %s593_s7 }
 0x29c   :  { %p458_p7 = pnand %p456_p6, %p453_p5 }
 0x29e   :  { %461 = shalt.err (!%p458_p7)
}
 0x29f   :  { %s465_s22 = smov 128   ;;  %s466_s23 = smov 8  }
 0x2a0   :  { %328 = dma.vmem_to_hbm [thread:$0]  %s323_s16, 256, %s593_s7, [#allocation3], %s465_s22, %s465_s22, %s466_s23  }
 0x2a1   :  { %462 = dma.done.wait [#allocation3], 256  }
 0x2a2   :  { %463 = vsyncadd [#allocation3], 4294967040 }
 0x2a3   :  { %332 = vsyncpa [#allocation3], 1 }

</bundles_post_ra>
